<compile_context>
chip_gen: v7x
topology: tpu7x:2x2x1
jax: 0.10.0
libtpu: 0.0.40
codegen_flags: <defaults>
</compile_context>

<pallas_src>
import functools

import jax
import jax.numpy as jnp
from jax.experimental import pallas as pl
from jax.experimental.pallas import tpu as pltpu


def _label_smoothing_kernel(logits_ref, target_ref, loss_ref, *, epsilon,
                            ignore_index):
    # logits_ref: (1, K, Tt)   target_ref: (1, 1, Tt)   loss_ref: (1, 1, Tt)
    x = logits_ref[0].astype(jnp.float32)          # (K, Tt): classes on sublanes
    t = target_ref[0]                              # (1, Tt) int32
    k = x.shape[0]

    # logsumexp over the class (sublane) axis.
    m = jnp.max(x, axis=0, keepdims=True)                              # (1, Tt)
    lse = jnp.log(jnp.sum(jnp.exp(x - m), axis=0, keepdims=True)) + m  # (1, Tt)

    # Smoothed target distribution weights, single fused sublane reduce:
    #   tp_k = eps/K + (1-eps) * [k == target]
    #   loss = -sum_k tp_k * (x_k - lse) = lse - sum_k tp_k * x_k
    smooth = jnp.float32(epsilon) / jnp.float32(k)
    cls = jax.lax.broadcasted_iota(jnp.int32, x.shape, 0)              # (K, Tt)
    tp = jnp.where(cls == t, jnp.float32(1.0 - epsilon) + smooth, smooth)
    per_pos = lse - jnp.sum(tp * x, axis=0, keepdims=True)             # (1, Tt)

    # Zero out ignored positions.  Lanes past T (ragged last tile) may hold
    # garbage, but their writes are dropped by the clamped output DMA.
    valid = t != ignore_index                                          # (1, Tt)
    loss_ref[0] = jnp.where(valid, per_pos, 0.0)


def label_smoothing_loss(logits_bkt, target_bt, *, ignore_index, epsilon=0.1,
                         t_tile=2048):
    """logits_bkt: (B, K, T) float; target_bt: (B, T) int. Returns scalar loss."""
    B, K, T = logits_bkt.shape
    lane = 128

    # Tile selection: full class dim per block, up to `t_tile` positions on the
    # lane axis, shrunk so a double-buffered f32 logits block stays well inside
    # the default scoped-VMEM limit on all generations (v5e/v6e/v7x).
    vmem_budget = 12 << 20                      # bytes for 2x logits buffers
    t_tile = min(int(t_tile), pl.cdiv(T, lane) * lane)
    while t_tile > lane and 2 * K * t_tile * 4 > vmem_budget:
        t_tile //= 2
    t_tile = max(lane, (t_tile // lane) * lane)
    nT = pl.cdiv(T, t_tile)
    # TODO(synk): for vocab-sized K (full-K block no longer fits VMEM), add a
    # class-axis grid dimension with a streaming/online logsumexp.

    t3 = target_bt.astype(jnp.int32).reshape(B, 1, T)

    kernel = functools.partial(_label_smoothing_kernel,
                               epsilon=float(epsilon),
                               ignore_index=int(ignore_index))

    loss_pos = pl.pallas_call(
        kernel,
        out_shape=jax.ShapeDtypeStruct((B, 1, T), jnp.float32),
        grid_spec=pltpu.PrefetchScalarGridSpec(
            num_scalar_prefetch=0,
            grid=(B, nT),
            in_specs=[
                pl.BlockSpec((1, K, t_tile), lambda b, j: (b, 0, j)),
                pl.BlockSpec((1, 1, t_tile), lambda b, j: (b, 0, j)),
            ],
            out_specs=pl.BlockSpec((1, 1, t_tile), lambda b, j: (b, 0, j)),
        ),
        compiler_params=pltpu.CompilerParams(
            dimension_semantics=("parallel", "parallel")),
    )(logits_bkt, t3)

    # Ignored positions were zeroed in the kernel; the valid count comes
    # straight from the original target tensor (tiny XLA reduction).
    valid_cnt = jnp.sum((target_bt != ignore_index).astype(jnp.float32))
    return jnp.sum(loss_pos) / valid_cnt


def _reference(logits_bkt, target_bt, *, ignore_index, epsilon=0.1):
    x = jnp.transpose(logits_bkt, (0, 2, 1)).astype(jnp.float32)  # (B, T, K)
    logp = jax.nn.log_softmax(x, axis=2)
    k = x.shape[2]
    tp = jnp.full_like(logp, epsilon / k)
    onehot = jnp.arange(k)[None, None, :] == target_bt[:, :, None]
    tp = jnp.where(onehot, 1.0 - epsilon + epsilon / k, tp)
    loss = -(tp * logp).sum(2)
    mask = (target_bt != ignore_index).astype(jnp.float32)
    return (loss * mask).sum() / mask.sum()


if __name__ == "__main__":
    key = jax.random.PRNGKey(0)
    B, K, T = 2, 32, 200         # batch, num classes, sequence length
    ignore_index = 0
    epsilon = 0.1

    k1, k2 = jax.random.split(key)
    logits = jax.random.normal(k1, (B, K, T), dtype=jnp.float32)
    target = jax.random.randint(k2, (B, T), 0, K, dtype=jnp.int32)

    out = label_smoothing_loss(logits, target,
                               ignore_index=ignore_index, epsilon=epsilon)
    out = jax.block_until_ready(out)

    ref = _reference(logits, target, ignore_index=ignore_index, epsilon=epsilon)
    assert jnp.allclose(out, ref, atol=1e-5, rtol=1e-5), (out, ref)

    print("KERNEL_OK")
</pallas_src>

<mosaic_0001>
module attributes {stable_mosaic.version = 11 : i64} {
  func.func @_label_smoothing_kernel(%arg0: i32, %arg1: i32, %arg2: memref<1x32x256xf32, #tpu.memory_space<vmem>>, %arg3: memref<1x1x256xi32, #tpu.memory_space<vmem>>, %arg4: memref<1x1x256xf32, #tpu.memory_space<vmem>>) attributes {dimension_semantics = [#tpu.dimension_semantics<parallel>, #tpu.dimension_semantics<parallel>], iteration_bounds = array<i64: 2, 1>, scalar_prefetch = 0 : i64, scratch_operands = 0 : i64, tpu.core_type = #tpu.core_type<tc>, window_params = [{transform_indices = @transform_0, window_bounds = array<i64: 1, 32, 256>}, {transform_indices = @transform_1, window_bounds = array<i64: 1, 1, 256>}, {transform_indices = @transform_2, window_bounds = array<i64: 1, 1, 256>}]} {
    %c0 = arith.constant 0 : index
    %c0_0 = arith.constant 0 : index
    %c0_1 = arith.constant 0 : index
    %0 = vector.load %arg2[%c0, %c0_0, %c0_1] : memref<1x32x256xf32, #tpu.memory_space<vmem>>, vector<1x32x256xf32>
    %1 = vector.shape_cast %0 : vector<1x32x256xf32> to vector<32x256xf32>
    %c0_2 = arith.constant 0 : index
    %c0_3 = arith.constant 0 : index
    %c0_4 = arith.constant 0 : index
    %2 = vector.load %arg3[%c0_2, %c0_3, %c0_4] : memref<1x1x256xi32, #tpu.memory_space<vmem>>, vector<1x1x256xi32>
    %3 = vector.shape_cast %2 : vector<1x1x256xi32> to vector<1x256xi32>
    %cst = arith.constant dense<0xFF800000> : vector<256xf32>
    %4 = vector.multi_reduction <maximumf>, %1, %cst [0] : vector<32x256xf32> to vector<256xf32>
    %5 = vector.shape_cast %4 : vector<256xf32> to vector<1x256xf32>
    %6 = vector.broadcast %5 : vector<1x256xf32> to vector<32x256xf32>
    %7 = arith.subf %1, %6 : vector<32x256xf32>
    %8 = math.exp %7 : vector<32x256xf32>
    %cst_5 = arith.constant dense<0.000000e+00> : vector<256xf32>
    %9 = vector.multi_reduction <add>, %8, %cst_5 [0] : vector<32x256xf32> to vector<256xf32>
    %10 = vector.shape_cast %9 : vector<256xf32> to vector<1x256xf32>
    %11 = math.log %10 : vector<1x256xf32>
    %12 = arith.addf %11, %5 : vector<1x256xf32>
    %cst_6 = arith.constant 1.000000e-01 : f32
    %cst_7 = arith.constant 3.200000e+01 : f32
    %13 = arith.divf %cst_6, %cst_7 : f32
    %14 = tpu.iota {dimensions = array<i32: 0>} : vector<32x256xi32>
    %15 = vector.broadcast %3 : vector<1x256xi32> to vector<32x256xi32>
    %16 = arith.cmpi eq, %14, %15 : vector<32x256xi32>
    %cst_8 = arith.constant 0.899999976 : f32
    %17 = arith.addf %cst_8, %13 : f32
    %18 = vector.broadcast %17 : f32 to vector<32x256xf32>
    %19 = vector.broadcast %13 : f32 to vector<32x256xf32>
    %20 = arith.select %16, %18, %19 : vector<32x256xi1>, vector<32x256xf32>
    %21 = arith.mulf %20, %1 : vector<32x256xf32>
    %cst_9 = arith.constant dense<0.000000e+00> : vector<256xf32>
    %22 = vector.multi_reduction <add>, %21, %cst_9 [0] : vector<32x256xf32> to vector<256xf32>
    %23 = vector.shape_cast %22 : vector<256xf32> to vector<1x256xf32>
    %24 = arith.subf %12, %23 : vector<1x256xf32>
    %c0_i32 = arith.constant 0 : i32
    %25 = vector.broadcast %c0_i32 : i32 to vector<1x256xi32>
    %26 = arith.cmpi ne, %3, %25 : vector<1x256xi32>
    %cst_10 = arith.constant 0.000000e+00 : f32
    %27 = vector.broadcast %cst_10 : f32 to vector<1x256xf32>
    %28 = arith.select %26, %24, %27 : vector<1x256xi1>, vector<1x256xf32>
    %c0_11 = arith.constant 0 : index
    %c0_12 = arith.constant 0 : index
    %c0_13 = arith.constant 0 : index
    %29 = vector.load %arg4[%c0_11, %c0_12, %c0_13] : memref<1x1x256xf32, #tpu.memory_space<vmem>>, vector<1x1x256xf32>
    %30 = vector.shape_cast %29 : vector<1x1x256xf32> to vector<1x256xf32>
    %31 = vector.shape_cast %28 : vector<1x256xf32> to vector<1x1x256xf32>
    tpu.vector_store %arg4[%c0_11, %c0_12, %c0_13], %31 {strides = array<i32>} : memref<1x1x256xf32, #tpu.memory_space<vmem>>, vector<1x1x256xf32>,
    return
  }
  func.func @transform_0(%arg0: i32, %arg1: i32) -> (i32, i32, i32) {
    %c0_i32 = arith.constant 0 : i32
    %c0_i32_0 = arith.constant 0 : i32
    return %arg0, %c0_i32, %arg1 : i32, i32, i32
  }
  func.func @transform_1(%arg0: i32, %arg1: i32) -> (i32, i32, i32) {
    %c0_i32 = arith.constant 0 : i32
    %c0_i32_0 = arith.constant 0 : i32
    return %arg0, %c0_i32, %arg1 : i32, i32, i32
  }
  func.func @transform_2(%arg0: i32, %arg1: i32) -> (i32, i32, i32) {
    %c0_i32 = arith.constant 0 : i32
    %c0_i32_0 = arith.constant 0 : i32
    return %arg0, %c0_i32, %arg1 : i32, i32, i32
  }
}

</mosaic_0001>

<bundles_post_ra>
// kernel: tpu_custom_call.1
= control target key start
LH: loop header
LB: loop body
LE: loop exit
PB: predicated region body
PF: predicated region fallthrough
CT: control target
= control target key end

     0   :  { %7 = vsyncpa [#allocation3], 0  ;;  %s1082_s0 = inlined_call_operand.hbm [shape: f32[2,32,200], index: 0, kind: input, shape index: {}]   ;;  %s1083_s1 = inlined_call_operand.hbm [shape: s32[2,1,200], index: 1, kind: input, shape index: {}]   ;;  %s1084_s2 = inlined_call_operand.hbm [shape: f32[2,1,200], index: 2, kind: output, shape index: {}]  }
   0x1   :  { %9 = vsyncpa [#allocation3 + $0x1], 0 }
   0x2   :  { %10 = vsyncpa [#allocation6], 0 }
   0x3   :  { %12 = vsyncpa [#allocation6 + $0x1], 0 }
   0x4   :  { %13 = vsyncpa [#allocation4], 0 }
   0x5   :  { %15 = vsyncpa [#allocation4 + $0x1], 0  ;;  %s792_s9 = smov 0   ;;  %s794_s10 = smov 0  }
   0x6   :  { %s796_s11 = smov 0   ;;  %s798_s12 = smov 0  }
   0x7   :  { %s800_s13 = smov 0   ;;  %s802_s14 = smov 0  }
   0x8 LB: > { %s509_s15 = sadd.s32 4294967295, %s768_s14   ;;  %s510_s16 = sadd.s32 4294967294, %s768_s14   ;;  %s768_s14 = sphi %s802_s14, %s21_s14   ;;  %s764_s13 = sphi %s800_s13, %s1103_s13   ;;  %s760_s12 = sphi %s798_s12, %s1102_s12   ;;  %s756_s11 = sphi %s796_s11, %s1101_s11   ;;  %s752_s10 = sphi %s794_s10, %s1100_s10   ;;  %s748_s9 = sphi %s792_s9, %s1099_s9  }
   0x9   : > { %s33_s17 = sadd.s32 1, %s764_s13  ;;  %s42_s18 = sadd.s32 1, %s756_s11 }
   0xa   : > { %p35_p0 = scmp.ge.s32.totalorder %s33_s17, 2  ;;  %p49_p1 = scmp.ne.s32.totalorder %s756_s11, %s752_s10 }
   0xb   : > { %p50_p2 = scmp.eq.s32.totalorder %s768_s14, 0  ;;  %p55_p3 = scmp.ne.s32.totalorder %s752_s10, %s748_s9 }
   0xc   : > { %s1105_s17 = smov (%p35_p0, %s33_s17), 0  ;;  %p56_p5 = scmp.eq.s32.totalorder %s509_s15, 0 }
   0xd   : > { %p833_p4 = por %p50_p2, %p49_p1  ;;  %s37_s20 = ssub.s32 %s764_s13, %s1105_s17 }
   0xe   : > { %p109_p6 = scmp.eq.s32.totalorder %s509_s15, 1  ;;  %p40_p7 = scmp.eq.s32.totalorder %s37_s20, 0 }
   0xf   : > { %p839_p8 = por %p56_p5, %p55_p3  ;;  %p115_p10 = scmp.eq.s32.totalorder %s510_s16, 1 }
  0x10   : > { %p843_p9 = por %p109_p6, %p49_p1  ;;  %p548_p13 = scmp.lt.s32.totalorder %s768_s14, 2 }
  0x11   : > { %s1088_s21 = scalar_select %p839_p8, 1, 0 }
  0x12   : > { %s1089_s22 = scalar_select %p843_p9, 1, 0 }
  0x13   : > { %s848_s23 = scalar_select %p40_p7, %s756_s11, %s42_s18  }
  0x14   : > { %p850_p11 = por %p115_p10, %p55_p3  ;;  %s857_s25 = sand.u32 1, %s756_s11  }
  0x15   : > { %s513_s26 = sshll.u32 %s857_s25, 6  ;;  %s528_s27 = sshll.u32 %s764_s13, 10 }
  0x16   : > { %s1090_s24 = scalar_select %p850_p11, 1, 0 }
  0x17   : > { %s864_s30 = scalar_lea.hbm %s1082_s0, %s528_s27  ;;  %s139_s3 = scalar_lea.vmem [#allocation2], %s513_s26 }
  0x18   : > { %s148_s4 = sshll.u32 %s139_s3, 4  ;;  %p870_p0 = pnand %p548_p13, %p833_p4  ;;  %s866_s4 = int_to_ptr.vmem [resolvable:$true] %s148_s4 }
  0x19   : > { %s136_s6 = scalar_lea.sflag [#allocation3], %s857_s25  ;;  %s622_s7 = scalar_lea.hbm %s864_s30, 1024 }
  0x1a   : > { %p623_p2 = scmp.ne.s32.totalorder %s864_s30, %s622_s7  ;;  %p624_p3 = pneg %p870_p0 }
  0x1b   : > { %s627_s16 = scalar_lea.hbm %s1082_s0, 2048  ;;  %p628_p4 = scmp.lt.u32.totalorder %s864_s30, %s1082_s0 }
  0x1c   : > { %p625_p5 = pnand %p624_p3, %p623_p2  ;;  %p629_p7 = scmp.lt.u32.totalorder %s627_s16, %s622_s7 }
  0x1d   : > { %p631_p13 = scmp.lt.u32.totalorder %s622_s7, %s864_s30 }
  0x1e   : > { %p626_p6 = pneg %p625_p5  ;;  %p630_p10 = por %p629_p7, %p628_p4 }
  0x20   : > { %p632_p12 = por %p631_p13, %p630_p10 }
  0x22   : > { %p633_p1 = pnand %p632_p12, %p626_p6 }
  0x24   : > { %636 = shalt.err (!%p633_p1)
}
  0x25   : > { %s637_s20 = scalar_lea.vmem %s866_s4, 1024  ;;  %s770_s26 = smov [#allocation2]  }
  0x26   : > { %p638_p2 = scmp.ne.s32.totalorder %s866_s4, %s637_s20  ;;  %s642_s27 = sshll.u32 %s770_s26, 4  ;;  %s643_s27 = int_to_ptr.vmem [resolvable:$false] %s642_s27 }
  0x27   : > { %s644_s28 = scalar_lea.vmem %s643_s27, 2048  ;;  %p645_p9 = scmp.lt.s32.totalorder %s866_s4, %s643_s27 }
  0x28   : > { %p640_p5 = pnand %p638_p2, %p624_p3  ;;  %p646_p4 = scmp.lt.s32.totalorder %s644_s28, %s637_s20 }
  0x2a   : > { %p641_p11 = pneg %p640_p5  ;;  %p647_p7 = por %p646_p4, %p645_p9 }
  0x2c   : > { %p648_p10 = pnand %p647_p7, %p641_p11 }
  0x2e   : > { %651 = shalt.err (!%p648_p10)
}
  0x2f   : > { %s771_s29 = smov 256   ;;  %s772_s3 = smov 16  }
  0x30   : > { %540 = dma.hbm_to_vmem [thread:$0]  (!%p870_p0), %s864_s30, 1024, %s866_s4, %s136_s6, %s771_s29, %s771_s29, %s772_s3  }
  0x31   : > { %p177_p12 = scmp.lt.s32.totalorder %s768_s14, 3  ;;  %s516_s7 = sshll.u32 %s857_s25, 1 }
  0x32   : > { %s529_s8 = sshll.u32 %s764_s13, 5  ;;  %p1092_p9 = scmp.ge.s32.totalorder %s768_s14, 1 }
  0x33   : > { %s915_s19 = scalar_lea.hbm %s1083_s1, %s529_s8  ;;  %s162_s20 = scalar_lea.vmem [#allocation5], %s516_s7 }
  0x34   : > { %p908_p11 = pnand %p1092_p9, %p177_p12  ;;  %s172_s26 = sshll.u32 %s162_s20, 4  ;;  %s173_s26 = int_to_ptr.vmem [resolvable:$true] %s172_s26 }
  0x35   : > { %s159_s30 = scalar_lea.sflag [#allocation6], %s857_s25  ;;  %s652_s4 = scalar_lea.hbm %s915_s19, 32 }
  0x36   : > { %s1093_s15 = scalar_select %p908_p11, 1, 0 }
  0x37   : > { %p653_p1 = scmp.ne.s32.totalorder %s915_s19, %s652_s4  ;;  %s657_s28 = scalar_lea.hbm %s1083_s1, 64 }
  0x38   : > { %p658_p2 = scmp.lt.u32.totalorder %s915_s19, %s1083_s1  ;;  %p659_p5 = scmp.lt.u32.totalorder %s657_s28, %s652_s4 }
  0x39   : > { %p655_p6 = pnand %p653_p1, %p624_p3  ;;  %p661_p7 = scmp.lt.u32.totalorder %s652_s4, %s915_s19 }
  0x3a   : > { %p660_p4 = por %p659_p5, %p658_p2 }
  0x3b   : > { %p656_p13 = pneg %p655_p6 }
  0x3c   : > { %p662_p10 = por %p661_p7, %p660_p4 }
  0x3e   : > { %p663_p12 = pnand %p662_p10, %p656_p13 }
  0x40   : > { %666 = shalt.err (!%p663_p12)
}
  0x41   : > { %s667_s25 = scalar_lea.vmem %s173_s26, 32  ;;  %s773_s7 = smov [#allocation5]  }
  0x42   : > { %p668_p9 = scmp.ne.s32.totalorder %s173_s26, %s667_s25  ;;  %s672_s8 = sshll.u32 %s773_s7, 4  ;;  %s673_s8 = int_to_ptr.vmem [resolvable:$false] %s672_s8 }
  0x43   : > { %s674_s16 = scalar_lea.vmem %s673_s8, 64  ;;  %p675_p8 = scmp.lt.s32.totalorder %s173_s26, %s673_s8 }
  0x44   : > { %p670_p1 = pnand %p668_p9, %p624_p3  ;;  %p676_p11 = scmp.lt.s32.totalorder %s674_s16, %s667_s25 }
  0x46   : > { %p671_p6 = pneg %p670_p1  ;;  %p677_p2 = por %p676_p11, %p675_p8 }
  0x48   : > { %p678_p5 = pnand %p677_p2, %p671_p6 }
  0x4a   : > { %681 = shalt.err (!%p678_p5)
}
  0x4b   : > { %543 = dma.hbm_to_vmem [thread:$0]  (!%p870_p0), %s915_s19, 32, %s173_s26, %s159_s30  }
  0x4c   : > { %p1094_p13 = scmp.ne.s32.totalorder %s1093_s15, 0 }
  0x4d   : > { %s940_s18 = sand.u32 (!%p1094_p13), 1, %s752_s10   ;;  %p1095_p3 = scmp.ne.s32.totalorder (!%p1094_p13), %s1088_s21, 0 }
  0x4e   : > { %181 = sbr.rel (%p1094_p13) target bundleno = 182 (0xb6), region = 28  ;;  %s520_s20 = sshll.u32 (!%p1094_p13), %s940_s18, 6 }
  0x4f   : > { %s184_s4 = scalar_lea.sflag (!%p1094_p13), [#allocation3], %s940_s18  ;;  %s187_s6 = scalar_lea.vmem (!%p1094_p13), [#allocation2], %s520_s20 }
  0x55   : > { %735 = dma.done.wait (%p1095_p3), %s184_s4, 1024  }
  0x56   : > { %737 = vsyncadd (%p1095_p3), %s184_s4, 4294966272  ;;  %s521_s5 = sshll.u32 %s940_s18, 1  ;;  %s193_s15 = scalar_lea.sflag [#allocation6], %s940_s18 }
  0x57   : > { %s196_s19 = scalar_lea.vmem [#allocation5], %s521_s5 }
  0x58   : > { %739 = dma.done.wait (%p1095_p3), %s193_s15, 32  }
  0x59   : > { %741 = vsyncadd (%p1095_p3), %s193_s15, 4294967264  ;;  %v956_v0 = vld [vmem:[%s187_s6] sm:$0xff]  ;;  %v958_v1 = vld [vmem:[%s187_s6 + $0x8] sm:$0xff]  ;;  %v300_v14 = vlaneseq  ;;  %v774_v52 = vmov 0.003125   ;;  %s221_s21 = scalar_lea.vmem [#allocation7], %s521_s5 }
  0x5a   : > { %v960_v2 = vld [vmem:[%s187_s6 + $0x10] sm:$0xff]  ;;  %v962_v3 = vld [vmem:[%s187_s6 + $0x18] sm:$0xff]  ;;  %v964_v4 = vld [vmem:[%s187_s6 + $0x20] sm:$0xff]  ;;  %s399_s26 = sshll.u32 %s221_s21, 4  ;;  %s530_s30 = sshll.u32 %s760_s12, 5  ;;  %s1030_s26 = int_to_ptr.vmem [resolvable:$true] %s399_s26 }
  0x5b   : > { %v966_v5 = vld [vmem:[%s187_s6 + $0x28] sm:$0xff]  ;;  %v968_v6 = vld [vmem:[%s187_s6 + $0x30] sm:$0xff]  ;;  %v970_v7 = vld [vmem:[%s187_s6 + $0x38] sm:$0xff]  ;;  %v234_v8 = vmax.f32 %v956_v0, %v964_v4  ;;  %v981_v19 = vshrl.u32 %v300_v14, 7  ;;  %vm379_vm9 = vcmp.lt.s32.totalorder %v300_v14, 256  ;;  %s1035_s29 = scalar_lea.hbm %s1084_s2, %s530_s30  ;;  %s383_s3 = scalar_lea.sflag [#allocation4], %s940_s18 }
  0x5c   : > { %v243_v9 = vmax.f32 %v958_v1, %v966_v5  ;;  %v235_v10 = vmax.f32 %v960_v2, %v968_v6  ;;  %v244_v11 = vmax.f32 %v962_v3, %v970_v7  ;;  %v984_v25 = vld [vmem:[%s196_s19] sm:$0x3]  ;;  %s682_s25 = scalar_lea.vmem %s1030_s26, 32  ;;  %p1096_p0 = scmp.ne.s32.totalorder %s1089_s22, 0 }
  0x5d   : > { %v307_v24 = vsub.s32 0, %v981_v19  ;;  %v311_v28 = vsub.s32 1, %v981_v19  ;;  %v302_v31 = vadd.s32 8, %v981_v19  ;;  %v303_v46 = vadd.s32 16, %v981_v19  ;;  %p683_p8 = scmp.ne.s32.totalorder %s1030_s26, %s682_s25  ;;  %s776_s12 = smov [#allocation7]  }
  0x5e   : > { %v236_v12 = vmax.f32 %v234_v8, %v235_v10  ;;  %v245_v13 = vmax.f32 %v243_v9, %v244_v11  ;;  %v304_v50 = vadd.s32 24, %v981_v19  ;;  %vm357_vm8 = vcmp.ne.s32.totalorder %v984_v25, 0  ;;  %s686_s7 = sshll.u32 %s776_s12, 4  ;;  %s687_s7 = int_to_ptr.vmem [resolvable:$false] %s686_s7 }
  0x5f   : > { %v308_v32 = vrot.slane %v984_v25, %v307_v24  ;;  %v312_v39 = vrot.slane %v984_v25, %v311_v28  ;;  %p684_p11 = pnand %p683_p8, %p1096_p0  ;;  %s688_s8 = scalar_lea.vmem %s687_s7, 64 }
  0x60   : > { %v237_v15 = vrot.slane %v236_v12, 4  ;;  %v246_v16 = vrot.slane %v245_v13, 4  ;;  %p689_p7 = scmp.lt.s32.totalorder %s1030_s26, %s687_s7  ;;  %p690_p10 = scmp.lt.s32.totalorder %s688_s8, %s682_s25 }
  0x61   : > { %vm313_vm0 = vcmp.eq.s32.totalorder %v981_v19, %v308_v32  ;;  %vm315_vm1 = vcmp.eq.s32.totalorder %v302_v31, %v308_v32  ;;  %vm314_vm2 = vcmp.eq.s32.totalorder %v981_v19, %v312_v39  ;;  %vm316_vm3 = vcmp.eq.s32.totalorder %v302_v31, %v312_v39  ;;  %p685_p4 = pneg %p684_p11 }
  0x62   : > { %v238_v17 = vmax.f32 %v236_v12, %v237_v15  ;;  %v247_v18 = vmax.f32 %v245_v13, %v246_v16  ;;  %v321_v53 = vsel %vm313_vm0, 0.903125, %v774_v52  ;;  %v323_v54 = vsel %vm315_vm1, 0.903125, %v774_v52  ;;  %p691_p12 = por %p690_p10, %p689_p7 }
  0x63   : > { %vm317_vm4 = vcmp.eq.s32.totalorder %v303_v46, %v308_v32  ;;  %v322_v55 = vsel %vm314_vm2, 0.903125, %v774_v52  ;;  %v324_v56 = vsel %vm316_vm3, 0.903125, %v774_v52  ;;  %vm318_vm5 = vcmp.eq.s32.totalorder %v303_v46, %v312_v39 }
  0x64   : > { %v239_v20 = vrot.slane %v238_v17, 2  ;;  %v248_v21 = vrot.slane %v247_v18, 2  ;;  %v329_v57 = vmul.f32 %v321_v53, %v956_v0  ;;  %v331_v58 = vmul.f32 %v323_v54, %v960_v2  ;;  %p692_p9 = pnand %p691_p12, %p685_p4 }
  0x65   : > { %v325_v59 = vsel %vm317_vm4, 0.903125, %v774_v52  ;;  %v330_v60 = vmul.f32 %v322_v55, %v958_v1  ;;  %v332_v61 = vmul.f32 %v324_v56, %v962_v3  ;;  %vm319_vm6 = vcmp.eq.s32.totalorder %v304_v50, %v308_v32 }
  0x66   : > { %v240_v22 = vmax.f32 %v238_v17, %v239_v20  ;;  %v249_v23 = vmax.f32 %v247_v18, %v248_v21  ;;  %v326_v62 = vsel %vm318_vm5, 0.903125, %v774_v52  ;;  %vm320_vm7 = vcmp.eq.s32.totalorder %v304_v50, %v312_v39 }
  0x67   : > { %v333_v8 = vmul.f32 %v325_v59, %v964_v4  ;;  %v337_v9 = vadd.f32 %v331_v58, %v329_v57  ;;  %v327_v11 = vsel %vm319_vm6, 0.903125, %v774_v52  ;;  %v334_v12 = vmul.f32 %v326_v62, %v966_v5 }
  0x68   : > { %v241_v26 = vrot.slane %v240_v22, 1  ;;  %v250_v27 = vrot.slane %v249_v23, 1 }
  0x69   : > { %v338_v18 = vadd.f32 %v337_v9, %v333_v8 }
  0x6a   : > { %v987_v29 = vmax.f32 %v240_v22, %v241_v26  ;;  %v989_v30 = vmax.f32 %v249_v23, %v250_v27 }
  0x6c   : > { %v252_v33 = vsub.f32 %v956_v0, %v987_v29  ;;  %v253_v34 = vsub.f32 %v958_v1, %v989_v30  ;;  %v254_v35 = vsub.f32 %v960_v2, %v987_v29  ;;  %v255_v36 = vsub.f32 %v962_v3, %v989_v30 }
  0x6d   : > { %v256_v37 = vsub.f32 %v964_v4, %v987_v29  ;;  %v257_v38 = vsub.f32 %v966_v5, %v989_v30  ;;  %v258_v40 = vsub.f32 %v968_v6, %v987_v29  ;;  %v259_v44 = vsub.f32 %v970_v7, %v989_v30 }
  0x6e   : > { %v260_v41 = vmul.f32 1.442695, %v252_v33  ;;  %v262_v42 = vmul.f32 1.442695, %v253_v34  ;;  %v264_v43 = vmul.f32 1.442695, %v254_v35  ;;  %v346_v0 = vadd.f32 %v332_v61, %v330_v60 }
  0x6f   : > { %v266_v45 = vmul.f32 1.442695, %v255_v36  ;;  %v268_v47 = vmul.f32 1.442695, %v256_v37  ;;  %v270_v48 = vmul.f32 1.442695, %v257_v38  ;;  %v335_v3 = vmul.f32 %v327_v11, %v968_v6 }
  0x70   : > { %602 = vpow2.f32 %v260_v41  ;;  %v272_v49 = vmul.f32 1.442695, %v258_v40  ;;  %v274_v51 = vmul.f32 1.442695, %v259_v44  ;;  %v328_v2 = vsel %vm320_vm7, 0.903125, %v774_v52 }
  0x71   : > { %604 = vpow2.f32 %v262_v42  ;;  %v336_v22 = vmul.f32 %v328_v2, %v970_v7  ;;  %v347_v4 = vadd.f32 %v346_v0, %v334_v12  ;;  %v339_v28 = vadd.f32 %v338_v18, %v335_v3 }
  0x72   : > { %606 = vpow2.f32 %v264_v43  ;;  %v775_v52 = vmov 1966171168  }
  0x73   : > { %608 = vpow2.f32 %v266_v45  ;;  %v348_v32 = vadd.f32 %v347_v4, %v336_v22  ;;  %v340_v36 = vrot.slane %v339_v28, 4  ;;  %v362_v53 = vunpack.c.l.s4 %v775_v52 }
  0x74   : > { %610 = vpow2.f32 %v268_v47 }
  0x75   : > { %612 = vpow2.f32 %v270_v48  ;;  %v349_v6 = vrot.slane %v348_v32, 4  ;;  %v341_v41 = vadd.f32 %v340_v36, %v339_v28  ;;  %v363_v60 = vunpack.c.0.s8 %v362_v53 }
  0x76   : > { %614 = vpow2.f32 %v272_v49 }
  0x77   : > { %616 = vpow2.f32 %v274_v51  ;;  %v350_v42 = vadd.f32 %v349_v6, %v348_v32  ;;  %v342_v46 = vrot.slane %v341_v41, 2  ;;  %v366_v9 = vsub.s32 %v363_v60, %v981_v19 }
  0x79   : > { %v351_v47 = vrot.slane %v350_v42, 2  ;;  %v343_v48 = vadd.f32 %v342_v46, %v341_v41 }
  0x7a   : > { %v603_v63 = vpop.eup %602 }
  0x7b   : > { %v605_v10 = vpop.eup %604  ;;  %v352_v49 = vadd.f32 %v351_v47, %v350_v42  ;;  %v344_v50 = vrot.slane %v343_v48, 1 }
  0x7c   : > { %v607_v13 = vpop.eup %606 }
  0x7d   : > { %v609_v15 = vpop.eup %608  ;;  %v276_v16 = vadd.f32 %v607_v13, %v603_v63  ;;  %v353_v51 = vrot.slane %v352_v49, 1  ;;  %v345_v57 = vadd.f32 %v344_v50, %v343_v48 }
  0x7e   : > { %v611_v17 = vpop.eup %610  ;;  %v285_v1 = vadd.f32 %v609_v15, %v605_v10 }
  0x7f   : > { %v613_v20 = vpop.eup %612  ;;  %v277_v21 = vadd.f32 %v611_v17, %v276_v16  ;;  %v354_v59 = vadd.f32 %v353_v51, %v352_v49 }
  0x80   : > { %v615_v23 = vpop.eup %614  ;;  %v286_v24 = vadd.f32 %v613_v20, %v285_v1 }
  0x81   : > { %v617_v26 = vpop.eup %616  ;;  %v278_v27 = vadd.f32 %v615_v23, %v277_v21 }
  0x82   : > { %v287_v5 = vadd.f32 %v617_v26, %v286_v24 }
  0x83   : > { %v279_v31 = vrot.slane %v278_v27, 4 }
  0x84   : > { %v288_v33 = vrot.slane %v287_v5, 4 }
  0x85   : > { %v280_v34 = vadd.f32 %v279_v31, %v278_v27 }
  0x86   : > { %v289_v35 = vadd.f32 %v288_v33, %v287_v5 }
  0x87   : > { %v281_v37 = vrot.slane %v280_v34, 2 }
  0x88   : > { %v290_v38 = vrot.slane %v289_v35, 2 }
  0x89   : > { %v282_v39 = vadd.f32 %v281_v37, %v280_v34 }
  0x8a   : > { %v291_v40 = vadd.f32 %v290_v38, %v289_v35 }
  0x8b   : > { %v283_v7 = vrot.slane %v282_v39, 1 }
  0x8c   : > { %v292_v43 = vrot.slane %v291_v40, 1 }
  0x8d   : > { %v284_v44 = vadd.f32 %v283_v7, %v282_v39 }
  0x8e   : > { %v293_v45 = vadd.f32 %v292_v43, %v291_v40 }
  0x8f   : > { %618 = vlog2.f32 %v284_v44 }
  0x90   : > { %620 = vlog2.f32 %v293_v45 }
  0x99   : > { %v619_v54 = vpop.eup %618 }
  0x9a   : > { %v621_v55 = vpop.eup %620  ;;  %v295_v56 = vmul.f32 0.6931472, %v619_v54 }
  0x9b   : > { %v297_v58 = vmul.f32 0.6931472, %v621_v55 }
  0x9c   : > { %v298_v61 = vadd.f32 %v295_v56, %v987_v29 }
  0x9d   : > { %v299_v62 = vadd.f32 %v297_v58, %v989_v30 }
  0x9e   : > { %v355_v63 = vsub.f32 %v298_v61, %v345_v57 }
  0x9f   : > { %v356_v8 = vsub.f32 %v299_v62, %v354_v59 }
  0xa1   : > { %v360_v10 = vcombine.low %v355_v63, %v356_v8 }
  0xa3   : > { %v367_v11 = vrot.slane %v360_v10, %v366_v9 }
  0xa5   : > { %v374_v12 = vrot.slane %v367_v11, %v366_v9 }
  0xa7   : > { %v376_v19 = vsel %vm357_vm8, %v374_v12, 0.0 }
  0xa8   : > { %381 = vst.msk [vmem:[%s221_s21] sm:$0x3] %vm379_vm9, %v376_v19 }
  0xa9   : > { %695 = shalt.err (!%p692_p9)
}
  0xaa   : > { %s696_s16 = scalar_lea.hbm %s1035_s29, 32  ;;  %s700_s4 = scalar_lea.hbm %s1084_s2, 64 }
  0xab   : > { %p697_p1 = scmp.ne.s32.totalorder %s1035_s29, %s696_s16  ;;  %p701_p5 = scmp.lt.u32.totalorder %s1035_s29, %s1084_s2 }
  0xac   : > { %p702_p13 = scmp.lt.u32.totalorder %s700_s4, %s696_s16  ;;  %p704_p8 = scmp.lt.u32.totalorder %s696_s16, %s1035_s29 }
  0xad   : > { %p698_p6 = pnand %p697_p1, %p1096_p0 }
  0xae   : > { %p703_p3 = por %p702_p13, %p701_p5 }
  0xaf   : > { %p699_p2 = pneg %p698_p6 }
  0xb0   : > { %p705_p11 = por %p704_p8, %p703_p3 }
  0xb2   : > { %p706_p4 = pnand %p705_p11, %p699_p2 }
  0xb4   : > { %709 = shalt.err (!%p706_p4)
}
  0xb5   : > { %535 = dma.vmem_to_hbm [thread:$0]  (%p1096_p0), %s1030_s26, 32, %s1035_s29, %s383_s3  }
  0xb6 PF: > { %s411_s15 = sand.u32 1, %s748_s9   ;;  %p1097_p7 = scmp.ne.s32.totalorder %s1090_s24, 0 }
  0xb7   : > { %p1098_p10 = scmp.ge.s32.totalorder %s768_s14, 2  ;;  %s412_s19 = scalar_lea.sflag [#allocation4], %s411_s15 }
  0xb9   : > { %p545_p12 = pnand %p1098_p10, %p1097_p7 }
  0xbb   : > { %743 = dma.done.wait (!%p545_p12), %s412_s19, 32  }
  0xbc   : > { %745 = vsyncadd (!%p545_p12), %s412_s19, 4294967264  ;;  %s21_s14 = sadd.s32 1, %s768_s14   ;;  %s1099_s9 = smov %s752_s10 }
  0xbd   : > { %p18_p9 = scmp.ge.s32.totalorder %s21_s14, 4   ;;  %s1100_s10 = smov %s756_s11 }
  0xbe   : > { %s1101_s11 = smov %s848_s23  ;;  %s1102_s12 = smov %s764_s13 }
  0xbf   : > { %s1103_s13 = smov %s1105_s17  ;;  %20 = sbr.rel (!%p18_p9) target bundleno = 8 (0x8), region = 86 }
  0xc6   :  { %417 = vsyncpa [#allocation3], 1 }
  0xc7   :  { %419 = vsyncpa [#allocation3 + $0x1], 1 }
  0xc8   :  { %420 = vsyncpa [#allocation6], 1 }
  0xc9   :  { %422 = vsyncpa [#allocation6 + $0x1], 1 }
  0xca   :  { %423 = vsyncpa [#allocation4], 1 }
  0xcb   :  { %425 = vsyncpa [#allocation4 + $0x1], 1 }

</bundles_post_ra>
